<compile_context>
chip_gen: v7x
topology: tpu7x:2x2x1
jax: 0.10.0
libtpu: 0.0.40
codegen_flags: <defaults>
</compile_context>

<pallas_src>
import jax
import jax.numpy as jnp
import numpy as np
from jax.experimental import pallas as pl
from jax.experimental.pallas import tpu as pltpu


def _round_up(x, m):
    return -(-x // m) * m


def _vmem_limit_bytes():
    # Raise the scoped VMEM limit (defaults 16 MiB v5e / 32 MiB v6e,v7x) while keeping headroom
    # below physical capacity (128 MiB v5e/v6e, 64 MiB v7x).
    try:
        cap = pltpu.get_tpu_info().vmem_capacity_bytes
    except Exception:
        cap = 64 * 1024 * 1024
    return int(max(min(cap - 16 * 1024 * 1024, 96 * 1024 * 1024), 32 * 1024 * 1024))


# -----------------------------------------------------------------------------------------
# Stage 1: fused LSTMCell + fa_hidden (tiny -> whole batch in one step, everything in VMEM)
# -----------------------------------------------------------------------------------------
def lstm_hidden_kernel(
    mean_ref,      # (B, D)        image_feat.mean(1), f32
    xstat_ref,     # (B, 2H+E)     pre-concatenated [h2, emb, h1], f32
    c1_ref,        # (B, H)        td_hidden cell state
    w_mean_ref,    # (D, 4H)       LSTM weight rows for img_mean, gate cols [i,f,o,g]
    w_rest_ref,    # (2H+E, 4H)    LSTM weight rows for [h2, emb, h1], gate cols [i,f,o,g]
    b_lstm_ref,    # (1, 4H)       b_ih + b_hh, gate cols [i,f,o,g]
    w_hid_ref,     # (H, A_pad)    fa_hidden effective (weight-normed) weight
    b_joint_ref,   # (1, A_pad)    b_hid + b_img (fa_image bias folded in here)
    h1o_ref,       # (B, H)        new td_hidden h
    c1o_ref,       # (B, H)        new td_hidden c
    hb_ref,        # (B, A_pad)    fa_hidden(h_new) + b_hid + b_img
):
    H = c1_ref.shape[1]
    # Two MXU pushes into one f32 accumulator -- no in-kernel concatenate of [img_mean, xstat].
    gates = (
        jnp.dot(mean_ref[...], w_mean_ref[...], preferred_element_type=jnp.float32)
        + jnp.dot(xstat_ref[...], w_rest_ref[...], preferred_element_type=jnp.float32)
        + b_lstm_ref[...]
    )                                                   # (B, 4H), cols = [ i | f | o | g ]
    sig = jax.nn.sigmoid(gates[:, : 3 * H])             # 3H sigmoids
    g_g = jnp.tanh(gates[:, 3 * H:])                    # + H tanh  (was 8H transcendentals)
    i_g = sig[:, :H]
    f_g = sig[:, H:2 * H]
    o_g = sig[:, 2 * H:3 * H]

    c_new = f_g * c1_ref[...] + i_g * g_g
    h_new = o_g * jnp.tanh(c_new)
    h1o_ref[...] = h_new
    c1o_ref[...] = c_new
    hb_ref[...] = (
        jnp.dot(h_new, w_hid_ref[...], preferred_element_type=jnp.float32)
        + b_joint_ref[...]
    )


# -----------------------------------------------------------------------------------------
# Stage 2: fa_image GEMM + broadcast-add + relu, tiled over (B, R)
# -----------------------------------------------------------------------------------------
def fa_image_kernel(img_ref, hb_ref, w_img_ref, joint_ref):
    # img_ref:   (bt, rt, D)     bf16 image tile
    # hb_ref:    (bt, 1, A_pad)  f32  hidden_fa + b_hid + b_img (broadcast over the R tile)
    # w_img_ref: (D, A_pad)      bf16 fa_image weight (grid-invariant)
    # joint_ref: (bt, rt, A_pad) f32
    bt, rt, D = img_ref.shape
    A_pad = w_img_ref.shape[1]
    img2d = img_ref[...].reshape(bt * rt, D)   # free view: rt % 8 == 0, D is the full minor dim
    fa = jnp.dot(img2d, w_img_ref[...], preferred_element_type=jnp.float32)
    # Single VPU pass: broadcast-add (bias already folded into hb) + relu, lane-dense store.
    joint_ref[...] = jnp.maximum(fa.reshape(bt, rt, A_pad) + hb_ref[...], 0.0)
    # TODO(synk): emit joint in bf16 if the downstream consumer tolerates it.


def top_down_attention_lstm(image_feat, embedding, h1, c1, h2, p, *, b_tile=None, r_tile=None):
    B, R, D = image_feat.shape
    H = h1.shape[1]
    A = p["attention_dim"]
    A_pad = p["w_img_bf16"].shape[1]
    vmem_limit = _vmem_limit_bytes()

    # ---- Stage 0 (XLA): R-reduction mean (kept in f32) + static concat; both tiny. ----------
    img_mean = jnp.mean(image_feat, axis=1)                        # (B, D)
    x_static = jnp.concatenate([h2, embedding, h1], axis=1)        # (B, 2H+E)

    # ---- Stage 1 (Pallas): LSTM cell + fa_hidden (+ folded fa_image bias). -------------------
    h_new, c_new, hidden_bias = pl.pallas_call(
        lstm_hidden_kernel,
        out_shape=(
            jax.ShapeDtypeStruct((B, H), jnp.float32),
            jax.ShapeDtypeStruct((B, H), jnp.float32),
            jax.ShapeDtypeStruct((B, A_pad), jnp.float32),
        ),
        compiler_params=pltpu.CompilerParams(vmem_limit_bytes=vmem_limit),
    )(img_mean, x_static, c1,
      p["w_lstm_mean"], p["w_lstm_rest"], p["b_lstm"],
      p["w_hid_t"], p["b_joint"])

    # ---- Stage 2 (Pallas): fa_image GEMM + relu over a (B, R) parallel grid. -----------------
    R_pad = _round_up(R, 8)                  # (8,128)-aligned reshape + unmasked output stores
    if R_pad != R:
        image_feat = jnp.pad(image_feat, ((0, 0), (0, R_pad - R), (0, 0)))
    # bf16 MXU operands (f32 accumulation): 2-4x MXU rate, half the DMA bytes / VMEM per tile.
    # TODO(synk): in a real model the producer should emit image_feat in bf16 directly.
    img_bf16 = image_feat.astype(jnp.bfloat16)
    hb3 = hidden_bias[:, None, :]            # (B, 1, A_pad), broadcasts over the R tile

    if b_tile is None:
        b_tile = B
    if r_tile is None:
        # Toy default gives >= 2 grid steps. Production: sweep b_tile/r_tile up to the largest
        # tile whose double-buffered bf16 image + f32 joint tiles plus the single-buffered
        # bf16 w_img fit the per-generation VMEM budget (~112 MiB v5e/v6e, ~48 MiB v7x),
        # keeping >= 2 grid steps per v7x TensorCore.
        r_tile = min(R_pad, 8)
    assert B % b_tile == 0 and R_pad % r_tile == 0
    grid = (B // b_tile, R_pad // r_tile)

    def fa_image_call(single_buffer_weights):
        if single_buffer_weights:
            # Grid-invariant weight: single resident buffer, don't waste VMEM double-buffering.
            w_spec = pl.BlockSpec((D, A_pad), lambda b, r: (0, 0),
                                  pipeline_mode=pl.Buffered(1))
        else:
            w_spec = pl.BlockSpec((D, A_pad), lambda b, r: (0, 0))
        return pl.pallas_call(
            fa_image_kernel,
            out_shape=jax.ShapeDtypeStruct((B, R_pad, A_pad), jnp.float32),
            grid=grid,
            in_specs=[
                pl.BlockSpec((b_tile, r_tile, D), lambda b, r: (b, r, 0)),
                pl.BlockSpec((b_tile, 1, A_pad), lambda b, r: (b, 0, 0)),
                w_spec,
            ],
            out_specs=pl.BlockSpec((b_tile, r_tile, A_pad), lambda b, r: (b, r, 0)),
            compiler_params=pltpu.CompilerParams(
                dimension_semantics=("parallel", "parallel"),
                vmem_limit_bytes=vmem_limit,
            ),
        )(img_bf16, hb3, p["w_img_bf16"])

    try:
        joint = fa_image_call(True)
    except Exception:
        # pl.Buffered(1) not supported by this jax/Mosaic version -> default buffering.
        joint = fa_image_call(False)

    if R_pad != R:
        joint = joint[:, :R, :]
    if A != A_pad:
        # TODO(synk): in production keep A % 128 == 0 or fold this lane slice into the consumer
        # (it is an extra HBM round trip over the largest output).
        joint = joint[:, :, :A]
    return joint, h_new, c_new


# -----------------------------------------------------------------------------------------
# Parameter prep
# -----------------------------------------------------------------------------------------
def _weight_norm(v, g):
    # PyTorch weight_norm(dim=0) on Linear weight (out, in): w[o,:] = g[o] * v[o,:] / ||v[o,:]||
    norm = jnp.sqrt(jnp.sum(v * v, axis=1, keepdims=True))
    return g[:, None] * v / norm


def _pad_lanes(x, target):
    pad = target - x.shape[-1]
    if pad == 0:
        return x
    return jnp.pad(x, [(0, 0)] * (x.ndim - 1) + [(0, pad)])


def _reorder_gates_ifgo_to_ifog(w, axis=0):
    # torch LSTMCell gate order is [i, f, g, o]; kernel uses [i, f, o, g] so the three sigmoid
    # gates are contiguous (one 3H-wide sigmoid + one H-wide tanh).
    i, f, g, o = jnp.split(w, 4, axis=axis)
    return jnp.concatenate([i, f, o, g], axis=axis)


def init_params(key, D, E, H, A):
    ks = jax.random.split(key, 10)
    f32 = jnp.float32
    A_pad = _round_up(A, 128)

    # fa_image = weight_norm(Linear(D, A))
    v_img = jax.random.normal(ks[0], (A, D), f32) * 0.1
    g_img = jax.random.uniform(ks[1], (A,), f32, 0.5, 1.5)
    b_img = jax.random.normal(ks[2], (A,), f32) * 0.1
    w_img = _weight_norm(v_img, g_img)                           # (A, D)

    # fa_hidden = weight_norm(Linear(H, A))
    v_hid = jax.random.normal(ks[3], (A, H), f32) * 0.1
    g_hid = jax.random.uniform(ks[4], (A,), f32, 0.5, 1.5)
    b_hid = jax.random.normal(ks[5], (A,), f32) * 0.1
    w_hid = _weight_norm(v_hid, g_hid)                           # (A, H)

    # LSTMCell(E + D + H, H): torch W_ih is (4H, H+D+E), input concat order [h2, img_mean, emb]
    in_dim = H + D + E
    w_ih = jax.random.normal(ks[6], (4 * H, in_dim), f32) * 0.1
    w_hh = jax.random.normal(ks[7], (4 * H, H), f32) * 0.1
    b_ih = jax.random.normal(ks[8], (4 * H,), f32) * 0.1
    b_hh = jax.random.normal(ks[9], (4 * H,), f32) * 0.1

    wih_h = w_ih[:, :H]              # h2 columns
    wih_m = w_ih[:, H:H + D]         # img_mean columns
    wih_e = w_ih[:, H + D:]          # embedding columns

    # Kernel-ready LSTM weights: gate cols reordered [i,f,o,g]; split into the img_mean block
    # and the static [h2, emb, h1] block so the kernel does two dots with no concatenate.
    w_lstm_mean = _reorder_gates_ifgo_to_ifog(wih_m).T                        # (D, 4H)
    w_lstm_rest = _reorder_gates_ifgo_to_ifog(
        jnp.concatenate([wih_h, wih_e, w_hh], axis=1)).T                      # (2H+E, 4H)
    b_lstm = _reorder_gates_ifgo_to_ifog(b_ih + b_hh).reshape(1, 4 * H)

    return {
        "attention_dim": A,
        "w_lstm_mean": w_lstm_mean,
        "w_lstm_rest": w_lstm_rest,
        "b_lstm": b_lstm,
        # fa_image weight as bf16 MXU operand (f32 accumulation in-kernel), lane-padded.
        "w_img_bf16": _pad_lanes(w_img.T, A_pad).astype(jnp.bfloat16),        # (D, A_pad)
        # fa_hidden stays f32 (tiny GEMM feeding the f32 broadcast term).
        "w_hid_t": _pad_lanes(w_hid.T, A_pad),                                # (H, A_pad)
        # fa_image bias folded into the fa_hidden bias: stage 2 does no bias add.
        "b_joint": _pad_lanes((b_img + b_hid).reshape(1, A), A_pad),          # (1, A_pad)
        # originals for the f32 reference
        "w_ih": w_ih, "w_hh": w_hh, "b_ih": b_ih, "b_hh": b_hh,
        "w_img": w_img, "b_img_v": b_img, "w_hid": w_hid, "b_hid_v": b_hid,
    }


def reference(image_feat, embedding, h1, c1, h2, p):
    img_mean = image_feat.mean(axis=1)
    x = jnp.concatenate([h2, img_mean, embedding], axis=1)
    gates = x @ p["w_ih"].T + p["b_ih"] + h1 @ p["w_hh"].T + p["b_hh"]
    H = h1.shape[1]
    i_g = jax.nn.sigmoid(gates[:, :H])
    f_g = jax.nn.sigmoid(gates[:, H:2 * H])
    g_g = jnp.tanh(gates[:, 2 * H:3 * H])
    o_g = jax.nn.sigmoid(gates[:, 3 * H:])
    c_new = f_g * c1 + i_g * g_g
    h_new = o_g * jnp.tanh(c_new)
    image_fa = image_feat @ p["w_img"].T + p["b_img_v"]
    hidden_fa = h_new @ p["w_hid"].T + p["b_hid_v"]
    joint = jax.nn.relu(image_fa + hidden_fa[:, None, :])
    return joint, h_new, c_new


if __name__ == "__main__":
    B, R = 2, 16                       # batch, num image regions (R multiple of 8 -> no pad)
    D, E, H, A = 64, 32, 32, 128       # image_feat_dim, embed_dim, hidden_dim, attention_dim
                                       # (A multiple of 128 -> lane-dense store, no lane slice)
    key = jax.random.PRNGKey(0)
    k_in, k_par = jax.random.split(key)
    ks = jax.random.split(k_in, 6)

    image_feat = jax.random.normal(ks[0], (B, R, D), jnp.float32)
    embedding = jax.random.normal(ks[1], (B, E), jnp.float32)
    h1 = jax.random.normal(ks[2], (B, H), jnp.float32) * 0.1   # registry td_hidden
    c1 = jax.random.normal(ks[3], (B, H), jnp.float32) * 0.1
    h2 = jax.random.normal(ks[4], (B, H), jnp.float32) * 0.1   # registry lm_hidden
    c2 = jax.random.normal(ks[5], (B, H), jnp.float32) * 0.1   # lm cell state (unused by fwd)

    params = init_params(k_par, D, E, H, A)

    joint, h1_new, c1_new = top_down_attention_lstm(image_feat, embedding, h1, c1, h2, params)
    jax.block_until_ready((joint, h1_new, c1_new))

    joint_r, h1_r, c1_r = reference(image_feat, embedding, h1, c1, h2, params)
    # LSTM / hidden path is pure f32 -> tight check; fa_image GEMM uses bf16 MXU operands with
    # f32 accumulation -> looser tolerance against the pure-f32 reference.
    np.testing.assert_allclose(np.asarray(h1_new), np.asarray(h1_r), rtol=1e-4, atol=1e-4)
    np.testing.assert_allclose(np.asarray(c1_new), np.asarray(c1_r), rtol=1e-4, atol=1e-4)
    np.testing.assert_allclose(np.asarray(joint), np.asarray(joint_r), rtol=2e-2, atol=2e-2)

    print("KERNEL_OK")
</pallas_src>

<mosaic_0001>
module attributes {stable_mosaic.version = 11 : i64} {
  func.func @lstm_hidden_kernel(%arg0: memref<2x64xf32, #tpu.memory_space<vmem>>, %arg1: memref<2x96xf32, #tpu.memory_space<vmem>>, %arg2: memref<2x32xf32, #tpu.memory_space<vmem>>, %arg3: memref<64x128xf32, #tpu.memory_space<vmem>>, %arg4: memref<96x128xf32, #tpu.memory_space<vmem>>, %arg5: memref<1x128xf32, #tpu.memory_space<vmem>>, %arg6: memref<32x128xf32, #tpu.memory_space<vmem>>, %arg7: memref<1x128xf32, #tpu.memory_space<vmem>>, %arg8: memref<2x32xf32, #tpu.memory_space<vmem>>, %arg9: memref<2x32xf32, #tpu.memory_space<vmem>>, %arg10: memref<2x128xf32, #tpu.memory_space<vmem>>) attributes {dimension_semantics = [], scalar_prefetch = 0 : i64, scratch_operands = 0 : i64, tpu.core_type = #tpu.core_type<tc>} {
    %c0 = arith.constant 0 : index
    %c0_0 = arith.constant 0 : index
    %0 = vector.load %arg0[%c0, %c0_0] : memref<2x64xf32, #tpu.memory_space<vmem>>, vector<2x64xf32>
    %c0_1 = arith.constant 0 : index
    %c0_2 = arith.constant 0 : index
    %1 = vector.load %arg3[%c0_1, %c0_2] : memref<64x128xf32, #tpu.memory_space<vmem>>, vector<64x128xf32>
    %cst = arith.constant dense<0.000000e+00> : vector<2x128xf32>
    %2 = tpu.matmul %0, %1, %cst {dimension_numbers = #tpu.dot_dimension_numbers<[1], [0], [0], [1], [0, 0, 1, 1], [], []>} : vector<2x64xf32>, vector<64x128xf32>, vector<2x128xf32> -> vector<2x128xf32>
    %c0_3 = arith.constant 0 : index
    %c0_4 = arith.constant 0 : index
    %3 = vector.load %arg1[%c0_3, %c0_4] : memref<2x96xf32, #tpu.memory_space<vmem>>, vector<2x96xf32>
    %c0_5 = arith.constant 0 : index
    %c0_6 = arith.constant 0 : index
    %4 = vector.load %arg4[%c0_5, %c0_6] : memref<96x128xf32, #tpu.memory_space<vmem>>, vector<96x128xf32>
    %cst_7 = arith.constant dense<0.000000e+00> : vector<2x128xf32>
    %5 = tpu.matmul %3, %4, %cst_7 {dimension_numbers = #tpu.dot_dimension_numbers<[1], [0], [0], [1], [0, 0, 1, 1], [], []>} : vector<2x96xf32>, vector<96x128xf32>, vector<2x128xf32> -> vector<2x128xf32>
    %6 = arith.addf %2, %5 : vector<2x128xf32>
    %c0_8 = arith.constant 0 : index
    %c0_9 = arith.constant 0 : index
    %7 = vector.load %arg5[%c0_8, %c0_9] : memref<1x128xf32, #tpu.memory_space<vmem>>, vector<1x128xf32>
    %8 = vector.broadcast %7 : vector<1x128xf32> to vector<2x128xf32>
    %9 = arith.addf %6, %8 : vector<2x128xf32>
    %10 = vector.extract_strided_slice %9 {offsets = [0, 0], sizes = [2, 96], strides = [1, 1]} : vector<2x128xf32> to vector<2x96xf32>
    %11 = arith.negf %10 : vector<2x96xf32>
    %12 = math.exp %11 : vector<2x96xf32>
    %cst_10 = arith.constant 1.000000e+00 : f32
    %13 = vector.broadcast %cst_10 : f32 to vector<2x96xf32>
    %14 = arith.addf %13, %12 : vector<2x96xf32>
    %15 = arith.divf %13, %14 : vector<2x96xf32>
    %16 = vector.extract_strided_slice %9 {offsets = [0, 96], sizes = [2, 32], strides = [1, 1]} : vector<2x128xf32> to vector<2x32xf32>
    %17 = math.tanh %16 : vector<2x32xf32>
    %18 = vector.extract_strided_slice %15 {offsets = [0, 0], sizes = [2, 32], strides = [1, 1]} : vector<2x96xf32> to vector<2x32xf32>
    %19 = vector.extract_strided_slice %15 {offsets = [0, 32], sizes = [2, 32], strides = [1, 1]} : vector<2x96xf32> to vector<2x32xf32>
    %20 = vector.extract_strided_slice %15 {offsets = [0, 64], sizes = [2, 32], strides = [1, 1]} : vector<2x96xf32> to vector<2x32xf32>
    %c0_11 = arith.constant 0 : index
    %c0_12 = arith.constant 0 : index
    %21 = vector.load %arg2[%c0_11, %c0_12] : memref<2x32xf32, #tpu.memory_space<vmem>>, vector<2x32xf32>
    %22 = arith.mulf %19, %21 : vector<2x32xf32>
    %23 = arith.mulf %18, %17 : vector<2x32xf32>
    %24 = arith.addf %22, %23 : vector<2x32xf32>
    %25 = math.tanh %24 : vector<2x32xf32>
    %26 = arith.mulf %20, %25 : vector<2x32xf32>
    %c0_13 = arith.constant 0 : index
    %c0_14 = arith.constant 0 : index
    %27 = vector.load %arg8[%c0_13, %c0_14] : memref<2x32xf32, #tpu.memory_space<vmem>>, vector<2x32xf32>
    tpu.vector_store %arg8[%c0_13, %c0_14], %26 {strides = array<i32>} : memref<2x32xf32, #tpu.memory_space<vmem>>, vector<2x32xf32>,
    %c0_15 = arith.constant 0 : index
    %c0_16 = arith.constant 0 : index
    %28 = vector.load %arg9[%c0_15, %c0_16] : memref<2x32xf32, #tpu.memory_space<vmem>>, vector<2x32xf32>
    tpu.vector_store %arg9[%c0_15, %c0_16], %24 {strides = array<i32>} : memref<2x32xf32, #tpu.memory_space<vmem>>, vector<2x32xf32>,
    %c0_17 = arith.constant 0 : index
    %c0_18 = arith.constant 0 : index
    %29 = vector.load %arg6[%c0_17, %c0_18] : memref<32x128xf32, #tpu.memory_space<vmem>>, vector<32x128xf32>
    %cst_19 = arith.constant dense<0.000000e+00> : vector<2x128xf32>
    %30 = tpu.matmul %26, %29, %cst_19 {dimension_numbers = #tpu.dot_dimension_numbers<[1], [0], [0], [1], [0, 0, 1, 1], [], []>} : vector<2x32xf32>, vector<32x128xf32>, vector<2x128xf32> -> vector<2x128xf32>
    %c0_20 = arith.constant 0 : index
    %c0_21 = arith.constant 0 : index
    %31 = vector.load %arg7[%c0_20, %c0_21] : memref<1x128xf32, #tpu.memory_space<vmem>>, vector<1x128xf32>
    %32 = vector.broadcast %31 : vector<1x128xf32> to vector<2x128xf32>
    %33 = arith.addf %30, %32 : vector<2x128xf32>
    %c0_22 = arith.constant 0 : index
    %c0_23 = arith.constant 0 : index
    %34 = vector.load %arg10[%c0_22, %c0_23] : memref<2x128xf32, #tpu.memory_space<vmem>>, vector<2x128xf32>
    tpu.vector_store %arg10[%c0_22, %c0_23], %33 {strides = array<i32>} : memref<2x128xf32, #tpu.memory_space<vmem>>, vector<2x128xf32>,
    return
  }
}

</mosaic_0001>

<bundles_post_ra>
// kernel: tpu_custom_call.1
= control target key start
LH: loop header
LB: loop body
LE: loop exit
PB: predicated region body
PF: predicated region fallthrough
CT: control target
= control target key end

     0   :  { %16 = vsyncpa [#allocation3], 0  ;;  %s937_s0 = inlined_call_operand.hbm [shape: f32[2,64], index: 0, kind: input, shape index: {}]   ;;  %s938_s1 = inlined_call_operand.vmem [shape: f32[2,96], index: 1, kind: input, shape index: {}]   ;;  %s939_s2 = inlined_call_operand.vmem [shape: f32[2,32], index: 2, kind: input, shape index: {}]   ;;  %s940_s3 = inlined_call_operand.hbm [shape: f32[64,128], index: 3, kind: input, shape index: {}]   ;;  %s941_s4 = inlined_call_operand.hbm [shape: f32[96,128], index: 4, kind: input, shape index: {}]   ;;  %s942_s5 = inlined_call_operand.vmem [shape: f32[1,128], index: 5, kind: input, shape index: {}]   ;;  %s943_s6 = inlined_call_operand.hbm [shape: f32[32,128], index: 6, kind: input, shape index: {}]   ;;  %s944_s7 = inlined_call_operand.vmem [shape: f32[1,128], index: 7, kind: input, shape index: {}]   ;;  %s945_s8 = inlined_call_operand.hbm [shape: f32[2,32], index: 8, kind: output, shape index: {0}]   ;;  %s946_s9 = inlined_call_operand.hbm [shape: f32[2,32], index: 9, kind: output, shape index: {1}]   ;;  %s947_s10 = inlined_call_operand.hbm [shape: f32[2,128], index: 10, kind: output, shape index: {2}]  }
   0x1   :  { %17 = vsyncpa [#allocation6], 0 }
   0x2   :  { %18 = vsyncpa [#allocation9], 0 }
   0x3   :  { %19 = vsyncpa [#allocation4], 0 }
   0x4   :  { %20 = vsyncpa [#allocation12], 0  ;;  %s747_s13 = smov [#allocation5]   ;;  %s583_s17 = scalar_lea.hbm %s940_s3, 1024 }
   0x5   :  { %s40_s14 = sshll.u32 %s747_s13, 4  ;;  %p584_p0 = scmp.ne.s32.totalorder %s940_s3, %s583_s17  ;;  %s41_s14 = int_to_ptr.vmem [resolvable:$true] %s40_s14 }
   0x6   :  { %p587_p1 = scmp.lt.u32.totalorder %s583_s17, %s940_s3 }
   0x8   :  { %p589_p2 = pnand %p587_p1, %p584_p0 }
   0xa   :  { %592 = shalt.err (!%p589_p2)
}
   0xb   :  { %s593_s22 = scalar_lea.vmem %s41_s14, 1024  ;;  %p598_p4 = scmp.lt.s32.totalorder %s41_s14, %s41_s14 }
   0xc   :  { %p594_p3 = scmp.ne.s32.totalorder %s41_s14, %s593_s22  ;;  %p599_p5 = scmp.lt.s32.totalorder %s593_s22, %s593_s22 }
   0xe   :  { %p600_p6 = por %p599_p5, %p598_p4 }
  0x10   :  { %p601_p7 = pnand %p600_p6, %p594_p3 }
  0x12   :  { %604 = shalt.err (!%p601_p7)
}
  0x13   :  { %s748_s23 = smov 128   ;;  %s749_s24 = smov 8  }
  0x14   :  { %46 = dma.hbm_to_vmem [thread:$0]  %s940_s3, 1024, %s41_s14, [#allocation6], %s748_s23, %s748_s23, %s749_s24  }
  0x15   :  { %s750_s27 = smov [#allocation2]   ;;  %s751_s29 = smov [#allocation7]  }
  0x16   :  { %s27_s28 = sshll.u32 %s750_s27, 4  ;;  %s52_s30 = sshll.u32 %s751_s29, 4  ;;  %s28_s28 = int_to_ptr.vmem [resolvable:$true] %s27_s28  ;;  %s53_s30 = int_to_ptr.vmem [resolvable:$true] %s52_s30 }
  0x17   :  { %s605_s13 = scalar_lea.hbm %s937_s0, 32 }
  0x18   :  { %p606_p8 = scmp.ne.s32.totalorder %s937_s0, %s605_s13  ;;  %p609_p9 = scmp.lt.u32.totalorder %s605_s13, %s937_s0 }
  0x1a   :  { %p611_p10 = pnand %p609_p9, %p606_p8 }
  0x1c   :  { %614 = shalt.err (!%p611_p10)
}
  0x1d   :  { %s615_s3 = scalar_lea.vmem %s28_s28, 32  ;;  %p620_p12 = scmp.lt.s32.totalorder %s28_s28, %s28_s28 }
  0x1e   :  { %p616_p11 = scmp.ne.s32.totalorder %s28_s28, %s615_s3  ;;  %p621_p13 = scmp.lt.s32.totalorder %s615_s3, %s615_s3 }
  0x20   :  { %p622_p0 = por %p621_p13, %p620_p12 }
  0x22   :  { %p623_p1 = pnand %p622_p0, %p616_p11 }
  0x24   :  { %626 = shalt.err (!%p623_p1)
}
  0x25   :  { %30 = dma.hbm_to_vmem [thread:$0]  %s937_s0, 32, %s28_s28, [#allocation3]  }
  0x26   :  { %s627_s22 = scalar_lea.hbm %s941_s4, 1536 }
  0x27   :  { %p628_p2 = scmp.ne.s32.totalorder %s941_s4, %s627_s22  ;;  %p631_p3 = scmp.lt.u32.totalorder %s627_s22, %s941_s4 }
  0x29   :  { %p633_p4 = pnand %p631_p3, %p628_p2 }
  0x2b   :  { %636 = shalt.err (!%p633_p4)
}
  0x2c   :  { %s637_s11 = scalar_lea.vmem %s53_s30, 1536  ;;  %p642_p6 = scmp.lt.s32.totalorder %s53_s30, %s53_s30 }
  0x2d   :  { %p638_p5 = scmp.ne.s32.totalorder %s53_s30, %s637_s11  ;;  %p643_p7 = scmp.lt.s32.totalorder %s637_s11, %s637_s11 }
  0x2f   :  { %p644_p8 = por %p643_p7, %p642_p6 }
  0x31   :  { %p645_p9 = pnand %p644_p8, %p638_p5 }
  0x33   :  { %648 = shalt.err (!%p645_p9)
}
  0x34   :  { %58 = dma.hbm_to_vmem [thread:$0]  %s941_s4, 1536, %s53_s30, [#allocation6], %s748_s23, %s748_s23, %s749_s24  }
  0x35   :  { %s752_s12 = smov [#allocation8]   ;;  %s649_s17 = scalar_lea.hbm %s943_s6, 512 }
  0x36   :  { %s66_s13 = sshll.u32 %s752_s12, 4  ;;  %p650_p10 = scmp.ne.s32.totalorder %s943_s6, %s649_s17  ;;  %s67_s13 = int_to_ptr.vmem [resolvable:$true] %s66_s13 }
  0x37   :  { %p653_p11 = scmp.lt.u32.totalorder %s649_s17, %s943_s6 }
  0x39   :  { %p655_p12 = pnand %p653_p11, %p650_p10 }
  0x3b   :  { %658 = shalt.err (!%p655_p12)
}
  0x3c   :  { %s659_s20 = scalar_lea.vmem %s67_s13, 512  ;;  %p664_p0 = scmp.lt.s32.totalorder %s67_s13, %s67_s13 }
  0x3d   :  { %p660_p13 = scmp.ne.s32.totalorder %s67_s13, %s659_s20  ;;  %p665_p1 = scmp.lt.s32.totalorder %s659_s20, %s659_s20 }
  0x3f   :  { %p666_p2 = por %p665_p1, %p664_p0 }
  0x41   :  { %p667_p3 = pnand %p666_p2, %p660_p13 }
  0x43   :  { %670 = shalt.err (!%p667_p3)
}
  0x44   :  { %72 = dma.hbm_to_vmem [thread:$0]  %s943_s6, 512, %s67_s13, [#allocation9], %s748_s23, %s748_s23, %s749_s24  }
  0x45   :  { %737 = dma.done.wait [#allocation3], 32  }
  0x46   :  { %738 = vsyncadd [#allocation3], 4294967264 }
  0x47   :  { %739 = dma.done.wait [#allocation6], 2560  }
  0x48   :  { %740 = vsyncadd [#allocation6], 4294964736 }
  0x49   :  { %741 = dma.done.wait [#allocation9], 512  }
  0x4a   :  { %742 = vsyncadd [#allocation9], 4294966784  ;;  %v753_v0 = vmov 0.0|0.0   ;;  %vm754_vm0 = vmmov 0   ;;  %v755_v1 = vmov 0.0   ;;  %v97_v2 = vld [vmem:[#allocation7] sm:$0xff] }
  0x4b   :  { %524 = vmatprep.subr.bf16.mxu0 %v753_v0  ;;  %542 = vmatprep.subr.bf16.mxu1 %v753_v0  ;;  %v98_v3 = vld [vmem:[#allocation7 + $0x8] sm:$0xff]  ;;  %v99_v4 = vld [vmem:[#allocation7 + $0x10] sm:$0xff]  ;;  %v100_v6 = vld [vmem:[#allocation7 + $0x18] sm:$0xff]  ;;  %vm183_vm1 = vcmask 523264   ;;  %vm109_vm2 = vcmask 785408   ;;  %s756_s22 = smov 32  }
  0x4c   :  { %510 = vmatprep.mubr.msk.f32.mxu1 %vm754_vm0, %v755_v1  ;;  %491 = vmatprep.mubr.msk.f32.mxu0 %vm754_vm0, %v755_v1  ;;  %v525_v5 = vpack.c.bf16 %v98_v3, %v97_v2  ;;  %v88_v7 = vld [vmem:[#allocation5] sm:$0xff]  ;;  %v89_v8 = vld [vmem:[#allocation5 + $0x8] sm:$0xff]  ;;  %v90_v10 = vld [vmem:[#allocation5 + $0x10] sm:$0xff]  ;;  %v528_v11 = vpack.c.bf16 %v100_v6, %v99_v4  ;;  %vm298_vm3 = vcmask 254976   ;;  %vm316_vm4 = vcmask 261120   ;;  %s760_s29 = smov [#allocation10]  }
  0x4d   :  { %v543_v9 = vpack.c.bf16 %v89_v8, %v88_v7  ;;  %v91_v12 = vld [vmem:[#allocation5 + $0x18] sm:$0xff]  ;;  %v101_v13 = vld [vmem:[#allocation7 + $0x20] sm:$0xff]  ;;  %v102_v14 = vld [vmem:[#allocation7 + $0x28] sm:$0xff]  ;;  %s396_s11 = sshll.u32 %s760_s29, 4  ;;  %s397_s11 = int_to_ptr.vmem [resolvable:$true] %s396_s11 }
  0x4e   :  { %526 = vmatpush3.bf16.msra.mxu0 %v525_v5  ;;  %v546_v15 = vpack.c.bf16 %v91_v12, %v90_v10  ;;  %v92_v16 = vld [vmem:[#allocation5 + $0x20] sm:$0xff]  ;;  %v93_v17 = vld [vmem:[#allocation5 + $0x28] sm:$0xff]  ;;  %v531_v18 = vpack.c.bf16 %v102_v14, %v101_v13  ;;  %v103_v19 = vld [vmem:[#allocation7 + $0x30] sm:$0xff] }
  0x4f   :  { %527 = vmatprep.subr.bf16.mxu0 %v753_v0  ;;  %544 = vmatpush3.bf16.msra.mxu1 %v543_v9  ;;  %v104_v20 = vld [vmem:[#allocation7 + $0x38] sm:$0xff]  ;;  %v549_v21 = vpack.c.bf16 %v93_v17, %v92_v16  ;;  %v94_v22 = vld [vmem:[#allocation5 + $0x30] sm:$0xff]  ;;  %v105_v25 = vld [vmem:[#allocation7 + $0x40] sm:$0xff] }
  0x50   :  { %545 = vmatprep.subr.bf16.mxu1 %v753_v0  ;;  %v95_v23 = vld [vmem:[#allocation5 + $0x38] sm:$0xff]  ;;  %v534_v24 = vpack.c.bf16 %v104_v20, %v103_v19  ;;  %v106_v26 = vld [vmem:[#allocation7 + $0x48] sm:$0xff]  ;;  %v107_v29 = vld [vmem:[#allocation7 + $0x50] sm:$0xff] }
  0x51   :  { %v552_v27 = vpack.c.bf16 %v95_v23, %v94_v22  ;;  %v537_v28 = vpack.c.bf16 %v106_v26, %v105_v25  ;;  %v108_v30 = vld [vmem:[#allocation7 + $0x58] sm:$0xff]  ;;  %v305_v53 = vld [vmem:[#allocation8] sm:$0xff]  ;;  %v306_v54 = vld [vmem:[#allocation8 + $0x8] sm:$0xff] }
  0x52   :  { %529 = vmatpush3.bf16.msra.mxu0 %v528_v11  ;;  %v87_v31 = vld [vmem:[#allocation2] sm:$0x3]  ;;  %v540_v32 = vpack.c.bf16 %v108_v30, %v107_v29  ;;  %v307_v55 = vld [vmem:[#allocation8 + $0x10] sm:$0xff]  ;;  %v555_v56 = vpack.c.bf16 %v306_v54, %v305_v53 }
  0x53   :  { %530 = vmatprep.subr.bf16.mxu0 %v753_v0  ;;  %547 = vmatpush3.bf16.msra.mxu1 %v546_v15  ;;  %v96_v33 = vld [vmem:[%s938_s1] sm:$0x3]  ;;  %s757_s1 = smov 96  }
  0x54   :  { %548 = vmatprep.subr.bf16.mxu1 %v753_v0  ;;  %v436_v37 = vld [vmem:[%s942_s5] ss:$0 sm:$0xff]  ;;  %s759_s5 = smov [#allocation11]  }
  0x55   :  { %v272_v42 = vld [vmem:[%s939_s2] sm:$0x3]  ;;  %s758_s2 = smov 64   ;;  %s406_s27 = sshll.u32 %s759_s5, 4  ;;  %s407_s27 = int_to_ptr.vmem [resolvable:$true] %s406_s27 }
  0x56   :  { %532 = vmatpush3.bf16.msra.mxu0 %v531_v18  ;;  %v308_v57 = vld [vmem:[#allocation8 + $0x18] sm:$0xff]  ;;  %s671_s0 = scalar_lea.vmem %s407_s27, 32  ;;  %p676_p5 = scmp.lt.s32.totalorder %s407_s27, %s407_s27 }
  0x57   :  { %533 = vmatprep.subr.bf16.mxu0 %v753_v0  ;;  %550 = vmatpush3.bf16.msra.mxu1 %v549_v21  ;;  %v558_v58 = vpack.c.bf16 %v308_v57, %v307_v55  ;;  %p672_p4 = scmp.ne.s32.totalorder %s407_s27, %s671_s0  ;;  %p677_p6 = scmp.lt.s32.totalorder %s671_s0, %s671_s0 }
  0x58   :  { %551 = vmatprep.subr.bf16.mxu1 %v753_v0 }
  0x59   :  { %p678_p7 = por %p677_p6, %p676_p5 }
  0x5a   :  { %535 = vmatpush3.bf16.msra.mxu0 %v534_v24 }
  0x5b   :  { %536 = vmatprep.subr.bf16.mxu0 %v753_v0  ;;  %553 = vmatpush3.bf16.msra.mxu1 %v552_v27  ;;  %p679_p8 = pnand %p678_p7, %p672_p4 }
  0x5c   :  { %554 = vmatprep.subr.bf16.mxu1 %v753_v0 }
  0x5e   :  { %538 = vmatpush3.bf16.msra.mxu0 %v537_v28  ;;  %511 = vmatmul.mubr.msk.f32.vlgmr.msra.gmra.mrb[0].mxu1 %vm183_vm1, %v87_v31 }
  0x5f   :  { %539 = vmatprep.subr.bf16.mxu0 %v753_v0  ;;  %521 = vmatprep.mubr.msk.f32.mxu1 %vm754_vm0, %v755_v1 }
  0x60   :  { %556 = vmatpush3.bf16.msra.mxu1 %v555_v56 }
  0x61   :  { %557 = vmatprep.subr.bf16.mxu1 %v753_v0 }
  0x62   :  { %541 = vmatpush3.bf16.msra.mxu0 %v540_v32 }
  0x64   :  { %559 = vmatpush3.bf16.msra.mxu1 %v558_v58 }
  0x65   :  { %492 = vmatmul.mubr.msk.f32.vlgmr.msra.gmra.mrb[0].mxu0 %vm109_vm2, %v96_v33 }
 0x131   :  { %v253_v34 = vpop.f32.mrb[0].mxu1 }
 0x132   :  { %v512_v35 = vpop.f32.mrb[1].mxu1 }
 0x138   :  { %v179_v36 = vpop.f32.mrb[0].mxu0 }
 0x139   :  { %v254_v38 = vadd.f32 %v253_v34, %v179_v36  ;;  %v493_v39 = vpop.f32.mrb[1].mxu0 }
 0x13b   :  { %v264_v40 = vadd.f32 %v436_v37, %v254_v38 }
 0x13d   :  { %575 = vtanh.f32 %v264_v40  ;;  %v437_v43 = vmul.f32 -1.442695, %v264_v40 }
 0x13f   :  { %577 = vpow2.f32 %v437_v43 }
 0x147   :  { %v576_v41 = vpop.eup %575 }
 0x148   :  { %279 = vrot.lane.b32.xlu0 %v576_v41, %s756_s22 }
 0x149   :  { %v578_v44 = vpop.eup %577 }
 0x14a   :  { %v268_v45 = vadd.f32 1.0, %v578_v44 }
 0x14c   :  { %274 = vrot.lane.b32.xlu0 %v272_v42, %s756_s22  ;;  %579 = vrcp.f32 %v268_v45 }
 0x156   :  { %v580_v46 = vpop.eup %579 }
 0x1ba   :  { %v280_v47 = vpop.permute.xlu0 %279 }
 0x1bb   :  { %v282_v48 = vmul.f32 %v580_v46, %v280_v47 }
 0x1bd   :  { %284 = vrot.lane.b32.xlu1 %v282_v48, %s756_s22 }
 0x1be   :  { %v275_v49 = vpop.permute.xlu0 %274 }
 0x1bf   :  { %v277_v50 = vmul.f32 %v580_v46, %v275_v49 }
 0x22f   :  { %v285_v51 = vpop.permute.xlu1 %284 }
 0x230   :  { %v287_v52 = vadd.f32 %v285_v51, %v277_v50 }
 0x232   :  { %581 = vtanh.f32 %v287_v52 }
 0x23c   :  { %v582_v59 = vpop.eup %581 }
 0x23d   :  { %290 = vrot.lane.b32.xlu1 %v582_v59, %s756_s22 }
 0x241   :  { %301 = vrot.lane.b32.xlu1 %v287_v52, %s757_s1 }
 0x2af   :  { %v291_v60 = vpop.permute.xlu1 %290 }
 0x2b0   :  { %v293_v61 = vmul.f32 %v580_v46, %v291_v60 }
 0x2b2   :  { %295 = vrot.lane.b32.xlu0 %v293_v61, %s758_s2 }
 0x2b3   :  { %v302_v62 = vpop.permute.xlu1 %301 }
 0x2b4   :  { %304 = vst.msk [vmem:[#allocation11] sm:$0x3] %vm298_vm3, %v302_v62 }
 0x324   :  { %v296_v63 = vpop.permute.xlu0 %295 }
 0x325   :  { %522 = vmatmul.mubr.msk.f32.vlgmr.msra.gmra.mrb[2].mxu1 %vm316_vm4, %v296_v63  ;;  %299 = vst.msk [vmem:[#allocation10] sm:$0x3] %vm298_vm3, %v296_v63 }
 0x326   :  { %682 = shalt.err (!%p679_p8)
}
 0x327   :  { %s683_s13 = scalar_lea.hbm %s946_s9, 32 }
 0x328   :  { %p684_p9 = scmp.ne.s32.totalorder %s946_s9, %s683_s13  ;;  %p687_p10 = scmp.lt.u32.totalorder %s683_s13, %s946_s9 }
 0x32a   :  { %p689_p11 = pnand %p687_p10, %p684_p9 }
 0x32c   :  { %692 = shalt.err (!%p689_p11)
}
 0x32d   :  { %409 = dma.vmem_to_hbm [thread:$0]  %s407_s27, 32, %s946_s9, [#allocation12]  }
 0x32e   :  { %s693_s19 = scalar_lea.vmem %s397_s11, 32  ;;  %p698_p13 = scmp.lt.s32.totalorder %s397_s11, %s397_s11 }
 0x32f   :  { %p694_p12 = scmp.ne.s32.totalorder %s397_s11, %s693_s19  ;;  %p699_p0 = scmp.lt.s32.totalorder %s693_s19, %s693_s19 }
 0x331   :  { %p700_p1 = por %p699_p0, %p698_p13 }
 0x333   :  { %p701_p2 = pnand %p700_p1, %p694_p12 }
 0x335   :  { %704 = shalt.err (!%p701_p2)
}
 0x336   :  { %s705_s30 = scalar_lea.hbm %s945_s8, 32 }
 0x337   :  { %p706_p3 = scmp.ne.s32.totalorder %s945_s8, %s705_s30  ;;  %p709_p4 = scmp.lt.u32.totalorder %s705_s30, %s945_s8 }
 0x339   :  { %p711_p5 = pnand %p709_p4, %p706_p3 }
 0x33b   :  { %714 = shalt.err (!%p711_p5)
}
 0x33c   :  { %399 = dma.vmem_to_hbm [thread:$0]  %s397_s11, 32, %s945_s8, [#allocation4]   ;;  %v438_v0 = vld [vmem:[%s944_s7] ss:$0 sm:$0xff] }
 0x33d   :  { %s761_s1 = smov [#allocation13]  }
 0x33e   :  { %s416_s2 = sshll.u32 %s761_s1, 4  ;;  %s417_s2 = int_to_ptr.vmem [resolvable:$true] %s416_s2 }
 0x33f   :  { %s715_s5 = scalar_lea.vmem %s417_s2, 32  ;;  %p720_p7 = scmp.lt.s32.totalorder %s417_s2, %s417_s2 }
 0x340   :  { %p716_p6 = scmp.ne.s32.totalorder %s417_s2, %s715_s5  ;;  %p721_p8 = scmp.lt.s32.totalorder %s715_s5, %s715_s5 }
 0x342   :  { %p722_p9 = por %p721_p8, %p720_p7 }
 0x344   :  { %p723_p10 = pnand %p722_p9, %p716_p6 }
 0x3f8   :  { %v385_v1 = vpop.f32.mrb[2].mxu1 }
 0x3f9   :  { %v386_v2 = vadd.f32 %v438_v0, %v385_v1  ;;  %v523_v3 = vpop.f32.mrb[3].mxu1 }
 0x3fb   :  { %389 = vst [vmem:[#allocation13] sm:$0x3] %v386_v2 }
 0x3fc   :  { %726 = shalt.err (!%p723_p10)
}
 0x3fd   :  { %s727_s29 = scalar_lea.hbm %s947_s10, 32 }
 0x3fe   :  { %p728_p11 = scmp.ne.s32.totalorder %s947_s10, %s727_s29  ;;  %p731_p12 = scmp.lt.u32.totalorder %s727_s29, %s947_s10 }
 0x400   :  { %p733_p13 = pnand %p731_p12, %p728_p11 }
 0x402   :  { %736 = shalt.err (!%p733_p13)
}
 0x403   :  { %419 = dma.vmem_to_hbm [thread:$0]  %s417_s2, 32, %s947_s10, [#allocation12]  }
 0x404   :  { %743 = dma.done.wait [#allocation4], 32  }
 0x405   :  { %744 = vsyncadd [#allocation4], 4294967264 }
 0x406   :  { %745 = dma.done.wait [#allocation12], 64  }
 0x407   :  { %746 = vsyncadd [#allocation12], 4294967232 }
 0x408   :  { %429 = vsyncpa [#allocation3], 1 }
 0x409   :  { %430 = vsyncpa [#allocation6], 1 }
 0x40a   :  { %431 = vsyncpa [#allocation9], 1 }
 0x40b   :  { %432 = vsyncpa [#allocation4], 1 }
 0x40c   :  { %433 = vsyncpa [#allocation12], 1 }

</bundles_post_ra>
